<compile_context>
chip_gen: v5e
topology: v5e:2x2
jax: 0.10.0
libtpu: 0.0.40
codegen_flags: <defaults>
</compile_context>

<pallas_src>
import functools

import jax
import jax.numpy as jnp
from jax.experimental import pallas as pl
from jax.experimental.pallas import tpu as pltpu


def _domain_classifier_kernel(x_ref, w1_ref, b1_ref, w2_ref, b2_ref, o_ref,
                              *, negative_slope):
    # d_fc2: (TB, D) x (H, D)^T -> (TB, H); contract on D in the native weight layout.
    h = jax.lax.dot_general(
        x_ref[...], w1_ref[...],
        dimension_numbers=(((1,), (1,)), ((), ())),
        preferred_element_type=jnp.float32)
    h = h + b1_ref[...]                              # (TB, H) + (1, H) broadcast

    # d_relu2: LeakyReLU (VPU select; overlaps with MXU work).
    h = jnp.where(h >= 0, h, negative_slope * h)

    # r_dropout: Dropout(p=0.2) -> inference-mode identity (no-op).

    # d_fc3: (TB, H) x (CPAD, H)^T -> (TB, CPAD); CPAD is lane-dense (multiple of 128).
    logits = jax.lax.dot_general(
        h, w2_ref[...],
        dimension_numbers=(((1,), (1,)), ((), ())),
        preferred_element_type=jnp.float32)
    logits = logits + b2_ref[...]                    # padded classes carry a -1e30 bias

    # d_pred: softmax over the class (lane) axis; padded lanes exp() to 0 so the
    # real-class probabilities are exact.
    m = jnp.max(logits, axis=-1, keepdims=True)
    e = jnp.exp(logits - m)
    s = jnp.sum(e, axis=-1, keepdims=True)
    o_ref[...] = (e / s).astype(o_ref.dtype)


def leaky_domain_classifier_forward(x, w1, b1, w2, b2, *,
                                    negative_slope=0.01, batch_tile=512):
    """x: (B, D) f32; w1: (H, D), b1: (H,), w2: (C, H), b2: (C,) — PyTorch nn.Linear layouts."""
    B, D = x.shape
    H, D_w = w1.shape
    C, H_w = w2.shape
    assert D == D_w and H == H_w

    # Lane-dense class dim: pad C up to a multiple of 128.  Zero weight rows plus a very
    # negative bias make padded classes mathematically inert through the softmax.
    CPAD = 128 * pl.cdiv(C, 128)
    w2p = jnp.zeros((CPAD, H), w2.dtype).at[:C].set(w2)
    b2p = jnp.full((CPAD,), -1e30, dtype=b2.dtype).at[:C].set(b2)

    b1_2d = b1.reshape(1, H)        # keep biases 2-D for TPU layout
    b2_2d = b2p.reshape(1, CPAD)

    TB = min(B, batch_tile)
    grid = (pl.cdiv(B, TB),)

    cost = pl.CostEstimate(
        flops=2 * B * D * H + 2 * B * H * CPAD,
        transcendentals=B * CPAD,
        bytes_accessed=4 * (B * D + H * D + H + CPAD * H + CPAD + B * CPAD),
    )

    kernel = functools.partial(_domain_classifier_kernel,
                               negative_slope=float(negative_slope))

    out = pl.pallas_call(
        kernel,
        out_shape=jax.ShapeDtypeStruct((B, CPAD), x.dtype),
        grid=grid,
        in_specs=[
            pl.BlockSpec((TB, D), lambda i: (i, 0)),     # x: batch-tiled
            pl.BlockSpec((H, D), lambda i: (0, 0)),      # w1: resident across batch tiles
            pl.BlockSpec((1, H), lambda i: (0, 0)),      # b1: resident
            pl.BlockSpec((CPAD, H), lambda i: (0, 0)),   # w2 (lane-padded): resident
            pl.BlockSpec((1, CPAD), lambda i: (0, 0)),   # b2 (lane-padded): resident
        ],
        out_specs=pl.BlockSpec((TB, CPAD), lambda i: (i, 0)),
        compiler_params=pltpu.CompilerParams(
            dimension_semantics=("parallel",)),          # batch axis shards across TCs (v7x)
        cost_estimate=cost,
    )(x, w1, b1_2d, w2p, b2_2d)

    return out[:, :C]                                    # drop the zero-probability pad classes


def _reference(x, w1, b1, w2, b2, negative_slope=0.01):
    h = x @ w1.T + b1[None, :]
    h = jnp.where(h >= 0, h, negative_slope * h)
    logits = h @ w2.T + b2[None, :]
    return jax.nn.softmax(logits, axis=1)


if __name__ == "__main__":
    # Deterministic synthetic parameters + inputs (module defaults scaled down for a fast test).
    key = jax.random.PRNGKey(0)
    k_x, k_w1, k_b1, k_w2, k_b2 = jax.random.split(key, 5)

    batch = 8
    init_features = 256     # module default 2560
    hidden = 128            # module arg (named batch_size) default 512
    nodes = 2

    x = jax.random.normal(k_x, (batch, init_features), dtype=jnp.float32)
    # Mimic nn.Linear default init scale (uniform in +-1/sqrt(fan_in)).
    bound1 = 1.0 / (init_features ** 0.5)
    w1 = jax.random.uniform(k_w1, (hidden, init_features),
                            minval=-bound1, maxval=bound1, dtype=jnp.float32)
    b1 = jax.random.uniform(k_b1, (hidden,),
                            minval=-bound1, maxval=bound1, dtype=jnp.float32)
    bound2 = 1.0 / (hidden ** 0.5)
    w2 = jax.random.uniform(k_w2, (nodes, hidden),
                            minval=-bound2, maxval=bound2, dtype=jnp.float32)
    b2 = jax.random.uniform(k_b2, (nodes,),
                            minval=-bound2, maxval=bound2, dtype=jnp.float32)

    out = leaky_domain_classifier_forward(x, w1, b1, w2, b2)
    out = jax.block_until_ready(out)

    ref = _reference(x, w1, b1, w2, b2)
    assert out.shape == (batch, nodes)
    assert jnp.allclose(out, ref, atol=1e-4, rtol=1e-4), "mismatch vs reference"
    assert jnp.allclose(out.sum(axis=1), 1.0, atol=1e-4), "softmax rows must sum to 1"

    print("KERNEL_OK")
</pallas_src>

<mosaic_0001>
module attributes {stable_mosaic.version = 11 : i64} {
  func.func @_domain_classifier_kernel(%arg0: i32, %arg1: memref<8x256xf32, #tpu.memory_space<vmem>>, %arg2: memref<128x256xf32, #tpu.memory_space<vmem>>, %arg3: memref<1x128xf32, #tpu.memory_space<vmem>>, %arg4: memref<128x128xf32, #tpu.memory_space<vmem>>, %arg5: memref<1x128xf32, #tpu.memory_space<vmem>>, %arg6: memref<8x128xf32, #tpu.memory_space<vmem>>) attributes {dimension_semantics = [#tpu.dimension_semantics<parallel>], iteration_bounds = array<i64: 1>, scalar_prefetch = 0 : i64, scratch_operands = 0 : i64, tpu.core_type = #tpu.core_type<tc>, window_params = [{transform_indices = @transform_0, window_bounds = array<i64: 8, 256>}, {pipeline_mode = #tpu.pipeline_mode<synchronous>, transform_indices = @transform_1, window_bounds = array<i64: 128, 256>}, {pipeline_mode = #tpu.pipeline_mode<synchronous>, transform_indices = @transform_2, window_bounds = array<i64: 1, 128>}, {pipeline_mode = #tpu.pipeline_mode<synchronous>, transform_indices = @transform_3, window_bounds = array<i64: 128, 128>}, {pipeline_mode = #tpu.pipeline_mode<synchronous>, transform_indices = @transform_4, window_bounds = array<i64: 1, 128>}, {transform_indices = @transform_5, window_bounds = array<i64: 8, 128>}]} {
    %c0 = arith.constant 0 : index
    %c0_0 = arith.constant 0 : index
    %0 = vector.load %arg1[%c0, %c0_0] : memref<8x256xf32, #tpu.memory_space<vmem>>, vector<8x256xf32>
    %c0_1 = arith.constant 0 : index
    %c0_2 = arith.constant 0 : index
    %1 = vector.load %arg2[%c0_1, %c0_2] : memref<128x256xf32, #tpu.memory_space<vmem>>, vector<128x256xf32>
    %cst = arith.constant dense<0.000000e+00> : vector<8x128xf32>
    %2 = tpu.matmul %0, %1, %cst {dimension_numbers = #tpu.dot_dimension_numbers<[1], [1], [0], [0], [0, 0, 1, 0], [], []>} : vector<8x256xf32>, vector<128x256xf32>, vector<8x128xf32> -> vector<8x128xf32>
    %c0_3 = arith.constant 0 : index
    %c0_4 = arith.constant 0 : index
    %3 = vector.load %arg3[%c0_3, %c0_4] : memref<1x128xf32, #tpu.memory_space<vmem>>, vector<1x128xf32>
    %4 = vector.broadcast %3 : vector<1x128xf32> to vector<8x128xf32>
    %5 = arith.addf %2, %4 : vector<8x128xf32>
    %cst_5 = arith.constant 0.000000e+00 : f32
    %6 = vector.broadcast %cst_5 : f32 to vector<8x128xf32>
    %7 = arith.cmpf oge, %5, %6 : vector<8x128xf32>
    %cst_6 = arith.constant 0.00999999977 : f32
    %8 = vector.broadcast %cst_6 : f32 to vector<8x128xf32>
    %9 = arith.mulf %8, %5 : vector<8x128xf32>
    %10 = arith.select %7, %5, %9 : vector<8x128xi1>, vector<8x128xf32>
    %c0_7 = arith.constant 0 : index
    %c0_8 = arith.constant 0 : index
    %11 = vector.load %arg4[%c0_7, %c0_8] : memref<128x128xf32, #tpu.memory_space<vmem>>, vector<128x128xf32>
    %cst_9 = arith.constant dense<0.000000e+00> : vector<8x128xf32>
    %12 = tpu.matmul %10, %11, %cst_9 {dimension_numbers = #tpu.dot_dimension_numbers<[1], [1], [0], [0], [0, 0, 1, 0], [], []>} : vector<8x128xf32>, vector<128x128xf32>, vector<8x128xf32> -> vector<8x128xf32>
    %c0_10 = arith.constant 0 : index
    %c0_11 = arith.constant 0 : index
    %13 = vector.load %arg5[%c0_10, %c0_11] : memref<1x128xf32, #tpu.memory_space<vmem>>, vector<1x128xf32>
    %14 = vector.broadcast %13 : vector<1x128xf32> to vector<8x128xf32>
    %15 = arith.addf %12, %14 : vector<8x128xf32>
    %cst_12 = arith.constant dense<0xFF800000> : vector<8xf32>
    %16 = vector.multi_reduction <maximumf>, %15, %cst_12 [1] : vector<8x128xf32> to vector<8xf32>
    %17 = vector.shape_cast %16 : vector<8xf32> to vector<8x1xf32>
    %18 = vector.broadcast %17 : vector<8x1xf32> to vector<8x128xf32>
    %19 = arith.subf %15, %18 : vector<8x128xf32>
    %20 = math.exp %19 : vector<8x128xf32>
    %cst_13 = arith.constant dense<0.000000e+00> : vector<8xf32>
    %21 = vector.multi_reduction <add>, %20, %cst_13 [1] : vector<8x128xf32> to vector<8xf32>
    %22 = vector.shape_cast %21 : vector<8xf32> to vector<8x1xf32>
    %23 = vector.broadcast %22 : vector<8x1xf32> to vector<8x128xf32>
    %24 = arith.divf %20, %23 : vector<8x128xf32>
    %c0_14 = arith.constant 0 : index
    %c0_15 = arith.constant 0 : index
    %25 = vector.load %arg6[%c0_14, %c0_15] : memref<8x128xf32, #tpu.memory_space<vmem>>, vector<8x128xf32>
    tpu.vector_store %arg6[%c0_14, %c0_15], %24 {strides = array<i32>} : memref<8x128xf32, #tpu.memory_space<vmem>>, vector<8x128xf32>,
    return
  }
  func.func @transform_0(%arg0: i32) -> (i32, i32) {
    %c0_i32 = arith.constant 0 : i32
    %c0_i32_0 = arith.constant 0 : i32
    return %arg0, %c0_i32 : i32, i32
  }
  func.func @transform_1(%arg0: i32) -> (i32, i32) {
    %c0_i32 = arith.constant 0 : i32
    %c0_i32_0 = arith.constant 0 : i32
    %c0_i32_1 = arith.constant 0 : i32
    return %c0_i32, %c0_i32_0 : i32, i32
  }
  func.func @transform_2(%arg0: i32) -> (i32, i32) {
    %c0_i32 = arith.constant 0 : i32
    %c0_i32_0 = arith.constant 0 : i32
    %c0_i32_1 = arith.constant 0 : i32
    return %c0_i32, %c0_i32_0 : i32, i32
  }
  func.func @transform_3(%arg0: i32) -> (i32, i32) {
    %c0_i32 = arith.constant 0 : i32
    %c0_i32_0 = arith.constant 0 : i32
    %c0_i32_1 = arith.constant 0 : i32
    return %c0_i32, %c0_i32_0 : i32, i32
  }
  func.func @transform_4(%arg0: i32) -> (i32, i32) {
    %c0_i32 = arith.constant 0 : i32
    %c0_i32_0 = arith.constant 0 : i32
    %c0_i32_1 = arith.constant 0 : i32
    return %c0_i32, %c0_i32_0 : i32, i32
  }
  func.func @transform_5(%arg0: i32) -> (i32, i32) {
    %c0_i32 = arith.constant 0 : i32
    %c0_i32_0 = arith.constant 0 : i32
    return %arg0, %c0_i32 : i32, i32
  }
}

</mosaic_0001>

<bundles_post_ra>
// kernel: tpu_custom_call.1
= control target key start
LH: loop header
LB: loop body
LE: loop exit
PB: predicated region body
PF: predicated region fallthrough
CT: control target
= control target key end

     0   :  { %10 = vsyncpa [#allocation3], 0  ;;  %s400_s0 = inlined_call_operand.hbm [shape: f32[8,256], index: 0, kind: input, shape index: {}]   ;;  %s401_s1 = inlined_call_operand.hbm [shape: f32[128,256], index: 1, kind: input, shape index: {}]   ;;  %s402_s2 = inlined_call_operand.vmem [shape: f32[1,128], index: 2, kind: input, shape index: {}]   ;;  %s403_s3 = inlined_call_operand.hbm [shape: f32[128,128], index: 3, kind: input, shape index: {}]   ;;  %s404_s4 = inlined_call_operand.vmem [shape: f32[1,128], index: 4, kind: input, shape index: {}]   ;;  %s405_s5 = inlined_call_operand.hbm [shape: f32[8,128], index: 5, kind: output, shape index: {}]  }
   0x1   :  { %11 = vsyncpa [#allocation6], 0  ;;  %s28_s20 = sshll.u32 %s401_s1, 4  ;;  %s29_s20 = int_to_ptr.hbm [resolvable:$true] %s28_s20 }
   0x2   :  { %12 = vsyncpa [#allocation4], 0  ;;  %s344_s21 = smov [#allocation5]   ;;  %s18_s25 = sshll.u32 %s400_s0, 4  ;;  %s19_s25 = int_to_ptr.hbm [resolvable:$true] %s18_s25 }
   0x3   :  { %s30_s22 = sshll.u32 %s344_s21, 4  ;;  %s345_s26 = smov 256   ;;  %s31_s22 = int_to_ptr.vmem [resolvable:$true] %s30_s22 }
   0x4   :  { %s346_s27 = smov 16   ;;  %s347_s28 = smov [#allocation2]  }
   0x5   :  { %36 = dma.hbm_to_vmem [thread:$0]  %s29_s20, 4096, %s31_s22, [#allocation6], %s345_s26, %s345_s26, %s346_s27  }
   0x6   :  { %s20_s29 = sshll.u32 %s347_s28, 4  ;;  %s43_s7 = sshll.u32 %s403_s3, 4  ;;  %s21_s29 = int_to_ptr.vmem [resolvable:$true] %s20_s29  ;;  %s44_s7 = int_to_ptr.hbm [resolvable:$true] %s43_s7 }
   0x7   :  { %23 = dma.hbm_to_vmem [thread:$0]  %s19_s25, 256, %s21_s29, [#allocation3]  }
   0x8   :  { %s348_s1 = smov [#allocation7]   ;;  %s349_s9 = smov 128  }
   0x9   :  { %s45_s8 = sshll.u32 %s348_s1, 4  ;;  %s350_s10 = smov 8   ;;  %s46_s8 = int_to_ptr.vmem [resolvable:$true] %s45_s8 }
   0xa   :  { %51 = dma.hbm_to_vmem [thread:$0]  %s44_s7, 2048, %s46_s8, [#allocation6], %s349_s9, %s349_s9, %s350_s10  }
   0xb   :  { %338 = dma.done.wait [#allocation3], 256  }
   0xc   :  { %339 = vsyncadd [#allocation3], 4294967040 }
   0xd   :  { %340 = dma.done.wait [#allocation6], 6144  }
   0xe   :  { %341 = vsyncadd [#allocation6], 4294961152  ;;  %v98_v0 = vld [vmem:[#allocation5 + $0xf0] sm:$0xff]  ;;  %v99_v1 = vld [vmem:[#allocation5 + $0xf8] sm:$0xff]  ;;  %s217_s15 = sshll.u32 %s405_s5, 4  ;;  %s218_s15 = int_to_ptr.hbm [resolvable:$true] %s217_s15 }
   0xf   :  { %104 = vmatpush.xpose.msra.mxu0 %v98_v0  ;;  %124 = vmatpush.xpose.msra.mxu1 %v99_v1  ;;  %v96_v2 = vld [vmem:[#allocation5 + $0xe0] sm:$0xff]  ;;  %v97_v3 = vld [vmem:[#allocation5 + $0xe8] sm:$0xff]  ;;  %v94_v4 = vld [vmem:[#allocation5 + $0xd0] sm:$0xff] }
  0x10   :  { %v95_v5 = vld [vmem:[#allocation5 + $0xd8] sm:$0xff]  ;;  %v92_v6 = vld [vmem:[#allocation5 + $0xc0] sm:$0xff]  ;;  %v93_v7 = vld [vmem:[#allocation5 + $0xc8] sm:$0xff] }
  0x11   :  { %v90_v8 = vld [vmem:[#allocation5 + $0xb0] sm:$0xff]  ;;  %v91_v9 = vld [vmem:[#allocation5 + $0xb8] sm:$0xff]  ;;  %v88_v10 = vld [vmem:[#allocation5 + $0xa0] sm:$0xff] }
  0x12   :  { %v89_v11 = vld [vmem:[#allocation5 + $0xa8] sm:$0xff]  ;;  %v86_v12 = vld [vmem:[#allocation5 + $0x90] sm:$0xff]  ;;  %v87_v13 = vld [vmem:[#allocation5 + $0x98] sm:$0xff] }
  0x13   :  { %105 = vmatpush.xpose.msra.mxu0 %v96_v2  ;;  %125 = vmatpush.xpose.msra.mxu1 %v97_v3  ;;  %v84_v14 = vld [vmem:[#allocation5 + $0x80] sm:$0xff]  ;;  %v85_v15 = vld [vmem:[#allocation5 + $0x88] sm:$0xff]  ;;  %v82_v16 = vld [vmem:[#allocation5 + $0x70] sm:$0xff] }
  0x14   :  { %v83_v17 = vld [vmem:[#allocation5 + $0x78] sm:$0xff]  ;;  %v80_v19 = vld [vmem:[#allocation5 + $0x60] sm:$0xff]  ;;  %v81_v20 = vld [vmem:[#allocation5 + $0x68] sm:$0xff] }
  0x15   :  { %v162_v18 = vld [vmem:[#allocation7 + $0x78] sm:$0xff]  ;;  %v161_v21 = vld [vmem:[#allocation7 + $0x70] sm:$0xff]  ;;  %v160_v24 = vld [vmem:[#allocation7 + $0x68] sm:$0xff] }
  0x16   :  { %167 = vmatpush.xpose.msra.mxu2 %v162_v18  ;;  %v78_v22 = vld [vmem:[#allocation5 + $0x50] sm:$0xff]  ;;  %v79_v23 = vld [vmem:[#allocation5 + $0x58] sm:$0xff]  ;;  %v76_v25 = vld [vmem:[#allocation5 + $0x40] sm:$0xff] }
  0x17   :  { %106 = vmatpush.xpose.msra.mxu0 %v94_v4  ;;  %126 = vmatpush.xpose.msra.mxu1 %v95_v5  ;;  %v77_v26 = vld [vmem:[#allocation5 + $0x48] sm:$0xff]  ;;  %v159_v27 = vld [vmem:[#allocation7 + $0x60] sm:$0xff]  ;;  %v74_v28 = vld [vmem:[#allocation5 + $0x30] sm:$0xff] }
  0x18   :  { %v75_v29 = vld [vmem:[#allocation5 + $0x38] sm:$0xff]  ;;  %v72_v31 = vld [vmem:[#allocation5 + $0x20] sm:$0xff]  ;;  %v73_v32 = vld [vmem:[#allocation5 + $0x28] sm:$0xff] }
  0x19   :  { %v158_v30 = vld [vmem:[#allocation7 + $0x58] sm:$0xff]  ;;  %v157_v33 = vld [vmem:[#allocation7 + $0x50] sm:$0xff]  ;;  %v156_v36 = vld [vmem:[#allocation7 + $0x48] sm:$0xff] }
  0x1a   :  { %168 = vmatpush.xpose.msra.mxu2 %v161_v21  ;;  %v70_v34 = vld [vmem:[#allocation5 + $0x10] sm:$0xff]  ;;  %v71_v35 = vld [vmem:[#allocation5 + $0x18] sm:$0xff]  ;;  %v68_v37 = vld [vmem:[#allocation5] sm:$0xff] }
  0x1b   :  { %107 = vmatpush.xpose.msra.mxu0 %v92_v6  ;;  %127 = vmatpush.xpose.msra.mxu1 %v93_v7  ;;  %v69_v38 = vld [vmem:[#allocation5 + $0x8] sm:$0xff]  ;;  %v155_v39 = vld [vmem:[#allocation7 + $0x40] sm:$0xff]  ;;  %v66_v40 = vld [vmem:[#allocation2] sm:$0xff] }
  0x1c   :  { %v67_v41 = vld [vmem:[#allocation2 + $0x8] sm:$0xff]  ;;  %v153_v43 = vld [vmem:[#allocation7 + $0x30] sm:$0xff]  ;;  %v152_v44 = vld [vmem:[#allocation7 + $0x28] sm:$0xff] }
  0x1d   :  { %v154_v42 = vld [vmem:[#allocation7 + $0x38] sm:$0xff]  ;;  %v151_v45 = vld [vmem:[#allocation7 + $0x20] sm:$0xff]  ;;  %v149_v47 = vld [vmem:[#allocation7 + $0x10] sm:$0xff] }
  0x1e   :  { %169 = vmatpush.xpose.msra.mxu2 %v160_v24  ;;  %v150_v46 = vld [vmem:[#allocation7 + $0x18] sm:$0xff]  ;;  %v148_v48 = vld [vmem:[#allocation7 + $0x8] sm:$0xff]  ;;  %v147_v49 = vld [vmem:[#allocation7] sm:$0xff] }
  0x1f   :  { %108 = vmatpush.xpose.msra.mxu0 %v90_v8  ;;  %128 = vmatpush.xpose.msra.mxu1 %v91_v9  ;;  %v236_v50 = vld [vmem:[%s402_s2] ss:$0 sm:$0xff]  ;;  %s351_s2 = smov [#allocation8]  }
  0x20   :  { %v237_v57 = vld [vmem:[%s404_s4] ss:$0 sm:$0xff]  ;;  %s215_s4 = sshll.u32 %s351_s2, 4  ;;  %s216_s4 = int_to_ptr.vmem [resolvable:$true] %s215_s4 }
  0x22   :  { %170 = vmatpush.xpose.msra.mxu2 %v159_v27 }
  0x23   :  { %109 = vmatpush.xpose.msra.mxu0 %v88_v10  ;;  %129 = vmatpush.xpose.msra.mxu1 %v89_v11 }
  0x26   :  { %171 = vmatpush.xpose.msra.mxu2 %v158_v30 }
  0x27   :  { %110 = vmatpush.xpose.msra.mxu0 %v86_v12  ;;  %130 = vmatpush.xpose.msra.mxu1 %v87_v13 }
  0x2a   :  { %172 = vmatpush.xpose.msra.mxu2 %v157_v33 }
  0x2b   :  { %111 = vmatpush.xpose.msra.mxu0 %v84_v14  ;;  %131 = vmatpush.xpose.msra.mxu1 %v85_v15 }
  0x2e   :  { %173 = vmatpush.xpose.msra.mxu2 %v156_v36 }
  0x2f   :  { %112 = vmatpush.xpose.msra.mxu0 %v82_v16  ;;  %132 = vmatpush.xpose.msra.mxu1 %v83_v17 }
  0x32   :  { %174 = vmatpush.xpose.msra.mxu2 %v155_v39 }
  0x33   :  { %113 = vmatpush.xpose.msra.mxu0 %v80_v19  ;;  %133 = vmatpush.xpose.msra.mxu1 %v81_v20 }
  0x36   :  { %175 = vmatpush.xpose.msra.mxu2 %v154_v42 }
  0x37   :  { %114 = vmatpush.xpose.msra.mxu0 %v78_v22  ;;  %134 = vmatpush.xpose.msra.mxu1 %v79_v23 }
  0x3a   :  { %176 = vmatpush.xpose.msra.mxu2 %v153_v43 }
  0x3b   :  { %115 = vmatpush.xpose.msra.mxu0 %v76_v25  ;;  %135 = vmatpush.xpose.msra.mxu1 %v77_v26 }
  0x3e   :  { %177 = vmatpush.xpose.msra.mxu2 %v152_v44 }
  0x3f   :  { %116 = vmatpush.xpose.msra.mxu0 %v74_v28  ;;  %136 = vmatpush.xpose.msra.mxu1 %v75_v29 }
  0x42   :  { %178 = vmatpush.xpose.msra.mxu2 %v151_v45 }
  0x43   :  { %117 = vmatpush.xpose.msra.mxu0 %v72_v31  ;;  %137 = vmatpush.xpose.msra.mxu1 %v73_v32 }
  0x46   :  { %179 = vmatpush.xpose.msra.mxu2 %v150_v46 }
  0x47   :  { %118 = vmatpush.xpose.msra.mxu0 %v70_v34  ;;  %138 = vmatpush.xpose.msra.mxu1 %v71_v35 }
  0x4a   :  { %180 = vmatpush.xpose.msra.mxu2 %v149_v47 }
  0x4b   :  { %119 = vmatpush.xpose.msra.mxu0 %v68_v37  ;;  %139 = vmatpush.xpose.msra.mxu1 %v69_v38 }
  0x4e   :  { %120 = vmatmul.f32.vlgmr.msra.gmra.mxu0 %v66_v40  ;;  %140 = vmatmul.f32.vlgmr.msra.gmra.mxu1 %v67_v41 }
  0x4f   :  { %181 = vmatpush.xpose.msra.mxu2 %v148_v48 }
  0x53   :  { %182 = vmatpush.xpose.msra.mxu2 %v147_v49 }
  0xcb   :  { %v121_v51 = vpop.f32.mrf.mxu0  ;;  %v141_v52 = vpop.f32.mrf.mxu1 }
  0xcc   :  { %v122_v53 = vadd.f32 %v236_v50, %v121_v51 }
  0xce   :  { %v142_v54 = vadd.f32 %v141_v52, %v122_v53 }
  0xd0   :  { %vm144_vm0 = vcmp.ge.f32.partialorder %v142_v54, 0.0  ;;  %v145_v55 = vmul.f32 0.01, %v142_v54 }
  0xd2   :  { %v146_v56 = vsel %vm144_vm0, %v142_v54, %v145_v55 }
  0xd3   :  { %183 = vmatmul.f32.vlgmr.msra.gmra.mxu2 %v146_v56 }
 0x156   :  { %v184_v58 = vpop.f32.mrf.mxu2 }
 0x157   :  { %v185_v59 = vadd.f32 %v237_v57, %v184_v58 }
 0x159   :  { %187 = vmax.xlane.f32.xlu0 %v185_v59 }
 0x1cc   :  { %v188_v60 = vpop.xlane.xlu0 %187 }
 0x1cd   :  { %v189_v61 = vsub.f32 %v185_v59, %v188_v60 }
 0x1cf   :  { %v190_v62 = vmul.f32 1.442695, %v189_v61 }
 0x1d1   :  { %238 = vpow2.f32 %v190_v62 }
 0x1d7   :  { %v239_v63 = vpop.eup %238 }
 0x1d8   :  { %192 = vadd.xlane.f32.xlu0 %v239_v63 }
 0x24b   :  { %v193_v0 = vpop.xlane.xlu0 %192 }
 0x24c   :  { %240 = vrcp.f32 %v193_v0  ;;  %v205_v4 = vand.u32 2147483648, %v193_v0  ;;  %v203_v6 = vand.u32 2147483647, %v193_v0  ;;  %vm199_vm2 = vweird.f32 %v193_v0 }
 0x24e   :  { %v206_v8 = vor.u32 1.1754944e-38, %v205_v4  ;;  %vm204_vm4 = vcmp.eq.f32.partialorder %v203_v6, 8.507059e+37 }
 0x252   :  { %v241_v1 = vpop.eup %240 }
 0x253   :  { %v195_v2 = vmul.f32 %v241_v1, %v193_v0  ;;  %vm200_vm1 = vweird.f32 %v241_v1 }
 0x254   :  { %vm201_vm3 = vmor %vm199_vm2, %vm200_vm1 }
 0x255   :  { %v196_v3 = vsub.f32 1.0, %v195_v2 }
 0x257   :  { %v197_v5 = vmul.f32 %v241_v1, %v196_v3 }
 0x259   :  { %v198_v7 = vadd.f32 %v241_v1, %v197_v5 }
 0x25b   :  { %v202_v9 = vsel %vm201_vm3, %v241_v1, %v198_v7 }
 0x25c   :  { %v207_v10 = vsel %vm204_vm4, %v206_v8, %v202_v9 }
 0x25d   :  { %v208_v11 = vmul.f32 %v239_v63, %v207_v10 }
 0x25f   :  { %209 = vst [vmem:[#allocation8] sm:$0xff] %v208_v11 }
 0x260   :  { %220 = dma.vmem_to_hbm [thread:$0]  %s216_s4, 128, %s218_s15, [#allocation4]  }
 0x261   :  { %342 = dma.done.wait [#allocation4], 128  }
 0x262   :  { %343 = vsyncadd [#allocation4], 4294967168 }
 0x263   :  { %225 = vsyncpa [#allocation3], 1 }
 0x264   :  { %226 = vsyncpa [#allocation6], 1 }
 0x265   :  { %227 = vsyncpa [#allocation4], 1 }

</bundles_post_ra>
